<compile_context>
chip_gen: v7x
topology: tpu7x:2x2x1
jax: 0.10.0
libtpu: 0.0.40
codegen_flags: <defaults>
</compile_context>

<pallas_src>
import jax
import jax.numpy as jnp
from jax import lax
from jax.experimental import pallas as pl
from jax.experimental.pallas import tpu as pltpu

# MLP layer sizes from the PyTorch module (final layer -> class_num appended)
LAYER_DIMS = [9, 36, 144, 288, 64, 32, 16]


def _round_up(x, m):
    return ((x + m - 1) // m) * m


def _choose_tile_b(batch, target=2048):
    """Balanced, sublane-aligned batch tiles; >=2 tiles for large B (v7x)."""
    n_tiles = max(1, -(-batch // target))
    if batch >= 1024:
        n_tiles = max(n_tiles, 2)          # let both v7x TensorCores work
    tile = -(-batch // n_tiles)
    return max(16, _round_up(tile, 16))    # 16: bf16 sublane packing


def _choose_strip(tile_b):
    """Row-strip size for in-kernel strip-mining (must divide tile_b)."""
    for s in (512, 256, 128):
        if tile_b > s and tile_b % s == 0:
            return s
    return tile_b


def make_mlp_kernel(tile_b, strip, n_layers):
    """Fused MLP forward over one (tile_b, .) batch tile.

    refs = (x_ref, w1, b1, ..., wN, bN, o_ref). The batch tile is processed in
    `strip`-row chunks with an unrolled fori_loop.
    """
    assert tile_b % strip == 0
    n_strips = tile_b // strip

    def mlp_kernel(*refs):
        x_ref = refs[0]
        o_ref = refs[-1]
        wb = [(refs[1 + 2 * i], refs[2 + 2 * i]) for i in range(n_layers)]

        def run_strip(r0):
            h = x_ref[pl.ds(r0, strip), :]                   # (strip, 9) bf16
            for li, (w_ref, b_ref) in enumerate(wb):
                # MXU: bf16 x bf16 -> f32 acc; bias add (+ReLU) in f32 on VPU.
                y = jnp.dot(h, w_ref[...],
                            preferred_element_type=jnp.float32) + b_ref[...]
                if li != n_layers - 1:
                    h = jnp.maximum(y, 0.0).astype(jnp.bfloat16)
                else:
                    # lane-dense (strip, 128) store -> unmasked vst
                    o_ref[pl.ds(r0, strip), :] = y.astype(o_ref.dtype)

        if n_strips == 1:
            run_strip(0)
        else:
            def body(s, carry):
                run_strip(pl.multiple_of(s * strip, strip))
                return carry
            lax.fori_loop(0, n_strips, body, 0, unroll=True)

    return mlp_kernel


def init_params(key, class_num):
    """nn.Linear-style init (uniform +-1/sqrt(fan_in)).

    Weights stored transposed vs. PyTorch, i.e. (in, out), as bf16 (MXU-native).
    Biases stored as (1, out) f32 (added in f32 inside the kernel).
    """
    dims = LAYER_DIMS + [class_num]
    params = []
    for i in range(len(dims) - 1):
        fan_in, fan_out = dims[i], dims[i + 1]
        key, kw, kb = jax.random.split(key, 3)
        bound = 1.0 / jnp.sqrt(jnp.float32(fan_in))
        w = jax.random.uniform(kw, (fan_in, fan_out), jnp.float32, -bound, bound)
        b = jax.random.uniform(kb, (1, fan_out), jnp.float32, -bound, bound)
        params.append((w.astype(jnp.bfloat16), b))
    return params


def nn_forward(x, params):
    """x: (B, C, H, W) or any (B, ...) with prod(...) == 9."""
    B = x.shape[0]
    x2d = x.reshape(B, -1).astype(jnp.bfloat16)    # torch.flatten(x, 1)
    assert x2d.shape[1] == LAYER_DIMS[0], "flattened feature dim must be 9"

    class_num = params[-1][1].shape[1]
    out_pad = max(128, _round_up(class_num, 128))  # lane-dense output width

    # Zero-pad the final layer's output columns to `out_pad` (still one MXU
    # pass); the padded columns are sliced off after the call.
    w_last, b_last = params[-1]
    w_last = jnp.pad(w_last, ((0, 0), (0, out_pad - class_num)))
    b_last = jnp.pad(b_last, ((0, 0), (0, out_pad - class_num)))
    kparams = list(params[:-1]) + [(w_last, b_last)]
    n_layers = len(kparams)

    tile_b = _choose_tile_b(B)
    strip = _choose_strip(tile_b)
    b_pad = pl.cdiv(B, tile_b) * tile_b
    if b_pad != B:
        x2d = jnp.pad(x2d, ((0, b_pad - B), (0, 0)))
    grid = (b_pad // tile_b,)

    flat_args = [x2d]
    in_specs = [pl.BlockSpec((tile_b, LAYER_DIMS[0]), lambda i: (i, 0))]
    for w, b in kparams:
        flat_args.extend([w, b])
        # full-shape blocks with constant index_map -> DMA'd once, resident in
        # VMEM across all batch tiles
        in_specs.append(pl.BlockSpec(w.shape, lambda i: (0, 0)))
        in_specs.append(pl.BlockSpec(b.shape, lambda i: (0, 0)))

    out = pl.pallas_call(
        make_mlp_kernel(tile_b, strip, n_layers),
        out_shape=jax.ShapeDtypeStruct((b_pad, out_pad), jnp.float32),
        grid=grid,
        in_specs=in_specs,
        out_specs=pl.BlockSpec((tile_b, out_pad), lambda i: (i, 0)),
        compiler_params=pltpu.CompilerParams(
            dimension_semantics=("parallel",),     # v7x: shard batch over 2 TCs
            vmem_limit_bytes=32 * 1024 * 1024,     # safe on v5e/v6e/v7x
        ),
    )(*flat_args)

    return out[:B, :class_num]


def nn_forward_ref(x, params):
    """Pure-JAX reference mimicking the kernel's bf16-input / f32-accum math."""
    h = x.reshape(x.shape[0], -1).astype(jnp.bfloat16)
    n = len(params)
    out = None
    for i, (w, b) in enumerate(params):
        y = jnp.dot(h.astype(jnp.float32), w.astype(jnp.float32)) + b
        if i != n - 1:
            h = jnp.maximum(y, 0.0).astype(jnp.bfloat16)
        else:
            out = y
    return out


if __name__ == "__main__":
    key = jax.random.PRNGKey(0)
    k_params, k_x1, k_x2 = jax.random.split(key, 3)

    class_num = 10
    params = init_params(k_params, class_num)

    # small input consistent with the module: flattens to 9 features
    x_small = jax.random.normal(k_x1, (2, 1, 3, 3), jnp.float32)
    out_small = jax.block_until_ready(nn_forward(x_small, params))
    ref_small = nn_forward_ref(x_small, params)
    assert out_small.shape == (2, class_num)
    assert jnp.allclose(out_small, ref_small, atol=1e-2, rtol=1e-2), \
        "small-batch mismatch vs reference"

    # larger batch: exercises multi-step grid (2 tiles) + in-kernel strip-mining
    x_big = jax.random.normal(k_x2, (1536, 1, 3, 3), jnp.float32)
    out_big = jax.block_until_ready(nn_forward(x_big, params))
    ref_big = nn_forward_ref(x_big, params)
    assert out_big.shape == (1536, class_num)
    assert jnp.allclose(out_big, ref_big, atol=1e-2, rtol=1e-2), \
        "large-batch mismatch vs reference"

    print("KERNEL_OK")
</pallas_src>

<mosaic_0001>
module attributes {stable_mosaic.version = 11 : i64} {
  func.func @mlp_kernel(%arg0: i32, %arg1: memref<16x9xbf16, #tpu.memory_space<vmem>>, %arg2: memref<9x36xbf16, #tpu.memory_space<vmem>>, %arg3: memref<1x36xf32, #tpu.memory_space<vmem>>, %arg4: memref<36x144xbf16, #tpu.memory_space<vmem>>, %arg5: memref<1x144xf32, #tpu.memory_space<vmem>>, %arg6: memref<144x288xbf16, #tpu.memory_space<vmem>>, %arg7: memref<1x288xf32, #tpu.memory_space<vmem>>, %arg8: memref<288x64xbf16, #tpu.memory_space<vmem>>, %arg9: memref<1x64xf32, #tpu.memory_space<vmem>>, %arg10: memref<64x32xbf16, #tpu.memory_space<vmem>>, %arg11: memref<1x32xf32, #tpu.memory_space<vmem>>, %arg12: memref<32x16xbf16, #tpu.memory_space<vmem>>, %arg13: memref<1x16xf32, #tpu.memory_space<vmem>>, %arg14: memref<16x128xbf16, #tpu.memory_space<vmem>>, %arg15: memref<1x128xf32, #tpu.memory_space<vmem>>, %arg16: memref<16x128xf32, #tpu.memory_space<vmem>>) attributes {dimension_semantics = [#tpu.dimension_semantics<parallel>], iteration_bounds = array<i64: 1>, scalar_prefetch = 0 : i64, scratch_operands = 0 : i64, tpu.core_type = #tpu.core_type<tc>, window_params = [{transform_indices = @transform_0, window_bounds = array<i64: 16, 9>}, {pipeline_mode = #tpu.pipeline_mode<synchronous>, transform_indices = @transform_1, window_bounds = array<i64: 9, 36>}, {pipeline_mode = #tpu.pipeline_mode<synchronous>, transform_indices = @transform_2, window_bounds = array<i64: 1, 36>}, {pipeline_mode = #tpu.pipeline_mode<synchronous>, transform_indices = @transform_3, window_bounds = array<i64: 36, 144>}, {pipeline_mode = #tpu.pipeline_mode<synchronous>, transform_indices = @transform_4, window_bounds = array<i64: 1, 144>}, {pipeline_mode = #tpu.pipeline_mode<synchronous>, transform_indices = @transform_5, window_bounds = array<i64: 144, 288>}, {pipeline_mode = #tpu.pipeline_mode<synchronous>, transform_indices = @transform_6, window_bounds = array<i64: 1, 288>}, {pipeline_mode = #tpu.pipeline_mode<synchronous>, transform_indices = @transform_7, window_bounds = array<i64: 288, 64>}, {pipeline_mode = #tpu.pipeline_mode<synchronous>, transform_indices = @transform_8, window_bounds = array<i64: 1, 64>}, {pipeline_mode = #tpu.pipeline_mode<synchronous>, transform_indices = @transform_9, window_bounds = array<i64: 64, 32>}, {pipeline_mode = #tpu.pipeline_mode<synchronous>, transform_indices = @transform_10, window_bounds = array<i64: 1, 32>}, {pipeline_mode = #tpu.pipeline_mode<synchronous>, transform_indices = @transform_11, window_bounds = array<i64: 32, 16>}, {pipeline_mode = #tpu.pipeline_mode<synchronous>, transform_indices = @transform_12, window_bounds = array<i64: 1, 16>}, {pipeline_mode = #tpu.pipeline_mode<synchronous>, transform_indices = @transform_13, window_bounds = array<i64: 16, 128>}, {pipeline_mode = #tpu.pipeline_mode<synchronous>, transform_indices = @transform_14, window_bounds = array<i64: 1, 128>}, {transform_indices = @transform_15, window_bounds = array<i64: 16, 128>}]} {
    %c0 = arith.constant 0 : index
    %c0_0 = arith.constant 0 : index
    %0 = vector.load %arg1[%c0, %c0_0] : memref<16x9xbf16, #tpu.memory_space<vmem>>, vector<16x9xbf16>
    %c0_1 = arith.constant 0 : index
    %c0_2 = arith.constant 0 : index
    %1 = vector.load %arg2[%c0_1, %c0_2] : memref<9x36xbf16, #tpu.memory_space<vmem>>, vector<9x36xbf16>
    %cst = arith.constant dense<0.000000e+00> : vector<16x36xf32>
    %2 = tpu.matmul %0, %1, %cst {dimension_numbers = #tpu.dot_dimension_numbers<[1], [0], [0], [1], [0, 0, 1, 1], [], []>} : vector<16x9xbf16>, vector<9x36xbf16>, vector<16x36xf32> -> vector<16x36xf32>
    %c0_3 = arith.constant 0 : index
    %c0_4 = arith.constant 0 : index
    %3 = vector.load %arg3[%c0_3, %c0_4] : memref<1x36xf32, #tpu.memory_space<vmem>>, vector<1x36xf32>
    %4 = vector.broadcast %3 : vector<1x36xf32> to vector<16x36xf32>
    %5 = arith.addf %2, %4 : vector<16x36xf32>
    %cst_5 = arith.constant 0.000000e+00 : f32
    %6 = vector.broadcast %cst_5 : f32 to vector<16x36xf32>
    %7 = arith.maximumf %5, %6 : vector<16x36xf32>
    %8 = arith.truncf %7 : vector<16x36xf32> to vector<16x36xbf16>
    %c0_6 = arith.constant 0 : index
    %c0_7 = arith.constant 0 : index
    %9 = vector.load %arg4[%c0_6, %c0_7] : memref<36x144xbf16, #tpu.memory_space<vmem>>, vector<36x144xbf16>
    %cst_8 = arith.constant dense<0.000000e+00> : vector<16x144xf32>
    %10 = tpu.matmul %8, %9, %cst_8 {dimension_numbers = #tpu.dot_dimension_numbers<[1], [0], [0], [1], [0, 0, 1, 1], [], []>} : vector<16x36xbf16>, vector<36x144xbf16>, vector<16x144xf32> -> vector<16x144xf32>
    %c0_9 = arith.constant 0 : index
    %c0_10 = arith.constant 0 : index
    %11 = vector.load %arg5[%c0_9, %c0_10] : memref<1x144xf32, #tpu.memory_space<vmem>>, vector<1x144xf32>
    %12 = vector.broadcast %11 : vector<1x144xf32> to vector<16x144xf32>
    %13 = arith.addf %10, %12 : vector<16x144xf32>
    %cst_11 = arith.constant 0.000000e+00 : f32
    %14 = vector.broadcast %cst_11 : f32 to vector<16x144xf32>
    %15 = arith.maximumf %13, %14 : vector<16x144xf32>
    %16 = arith.truncf %15 : vector<16x144xf32> to vector<16x144xbf16>
    %c0_12 = arith.constant 0 : index
    %c0_13 = arith.constant 0 : index
    %17 = vector.load %arg6[%c0_12, %c0_13] : memref<144x288xbf16, #tpu.memory_space<vmem>>, vector<144x288xbf16>
    %cst_14 = arith.constant dense<0.000000e+00> : vector<16x288xf32>
    %18 = tpu.matmul %16, %17, %cst_14 {dimension_numbers = #tpu.dot_dimension_numbers<[1], [0], [0], [1], [0, 0, 1, 1], [], []>} : vector<16x144xbf16>, vector<144x288xbf16>, vector<16x288xf32> -> vector<16x288xf32>
    %c0_15 = arith.constant 0 : index
    %c0_16 = arith.constant 0 : index
    %19 = vector.load %arg7[%c0_15, %c0_16] : memref<1x288xf32, #tpu.memory_space<vmem>>, vector<1x288xf32>
    %20 = vector.broadcast %19 : vector<1x288xf32> to vector<16x288xf32>
    %21 = arith.addf %18, %20 : vector<16x288xf32>
    %cst_17 = arith.constant 0.000000e+00 : f32
    %22 = vector.broadcast %cst_17 : f32 to vector<16x288xf32>
    %23 = arith.maximumf %21, %22 : vector<16x288xf32>
    %24 = arith.truncf %23 : vector<16x288xf32> to vector<16x288xbf16>
    %c0_18 = arith.constant 0 : index
    %c0_19 = arith.constant 0 : index
    %25 = vector.load %arg8[%c0_18, %c0_19] : memref<288x64xbf16, #tpu.memory_space<vmem>>, vector<288x64xbf16>
    %cst_20 = arith.constant dense<0.000000e+00> : vector<16x64xf32>
    %26 = tpu.matmul %24, %25, %cst_20 {dimension_numbers = #tpu.dot_dimension_numbers<[1], [0], [0], [1], [0, 0, 1, 1], [], []>} : vector<16x288xbf16>, vector<288x64xbf16>, vector<16x64xf32> -> vector<16x64xf32>
    %c0_21 = arith.constant 0 : index
    %c0_22 = arith.constant 0 : index
    %27 = vector.load %arg9[%c0_21, %c0_22] : memref<1x64xf32, #tpu.memory_space<vmem>>, vector<1x64xf32>
    %28 = vector.broadcast %27 : vector<1x64xf32> to vector<16x64xf32>
    %29 = arith.addf %26, %28 : vector<16x64xf32>
    %cst_23 = arith.constant 0.000000e+00 : f32
    %30 = vector.broadcast %cst_23 : f32 to vector<16x64xf32>
    %31 = arith.maximumf %29, %30 : vector<16x64xf32>
    %32 = arith.truncf %31 : vector<16x64xf32> to vector<16x64xbf16>
    %c0_24 = arith.constant 0 : index
    %c0_25 = arith.constant 0 : index
    %33 = vector.load %arg10[%c0_24, %c0_25] : memref<64x32xbf16, #tpu.memory_space<vmem>>, vector<64x32xbf16>
    %cst_26 = arith.constant dense<0.000000e+00> : vector<16x32xf32>
    %34 = tpu.matmul %32, %33, %cst_26 {dimension_numbers = #tpu.dot_dimension_numbers<[1], [0], [0], [1], [0, 0, 1, 1], [], []>} : vector<16x64xbf16>, vector<64x32xbf16>, vector<16x32xf32> -> vector<16x32xf32>
    %c0_27 = arith.constant 0 : index
    %c0_28 = arith.constant 0 : index
    %35 = vector.load %arg11[%c0_27, %c0_28] : memref<1x32xf32, #tpu.memory_space<vmem>>, vector<1x32xf32>
    %36 = vector.broadcast %35 : vector<1x32xf32> to vector<16x32xf32>
    %37 = arith.addf %34, %36 : vector<16x32xf32>
    %cst_29 = arith.constant 0.000000e+00 : f32
    %38 = vector.broadcast %cst_29 : f32 to vector<16x32xf32>
    %39 = arith.maximumf %37, %38 : vector<16x32xf32>
    %40 = arith.truncf %39 : vector<16x32xf32> to vector<16x32xbf16>
    %c0_30 = arith.constant 0 : index
    %c0_31 = arith.constant 0 : index
    %41 = vector.load %arg12[%c0_30, %c0_31] : memref<32x16xbf16, #tpu.memory_space<vmem>>, vector<32x16xbf16>
    %cst_32 = arith.constant dense<0.000000e+00> : vector<16x16xf32>
    %42 = tpu.matmul %40, %41, %cst_32 {dimension_numbers = #tpu.dot_dimension_numbers<[1], [0], [0], [1], [0, 0, 1, 1], [], []>} : vector<16x32xbf16>, vector<32x16xbf16>, vector<16x16xf32> -> vector<16x16xf32>
    %c0_33 = arith.constant 0 : index
    %c0_34 = arith.constant 0 : index
    %43 = vector.load %arg13[%c0_33, %c0_34] : memref<1x16xf32, #tpu.memory_space<vmem>>, vector<1x16xf32>
    %44 = vector.broadcast %43 : vector<1x16xf32> to vector<16x16xf32>
    %45 = arith.addf %42, %44 : vector<16x16xf32>
    %cst_35 = arith.constant 0.000000e+00 : f32
    %46 = vector.broadcast %cst_35 : f32 to vector<16x16xf32>
    %47 = arith.maximumf %45, %46 : vector<16x16xf32>
    %48 = arith.truncf %47 : vector<16x16xf32> to vector<16x16xbf16>
    %c0_36 = arith.constant 0 : index
    %c0_37 = arith.constant 0 : index
    %49 = vector.load %arg14[%c0_36, %c0_37] : memref<16x128xbf16, #tpu.memory_space<vmem>>, vector<16x128xbf16>
    %cst_38 = arith.constant dense<0.000000e+00> : vector<16x128xf32>
    %50 = tpu.matmul %48, %49, %cst_38 {dimension_numbers = #tpu.dot_dimension_numbers<[1], [0], [0], [1], [0, 0, 1, 1], [], []>} : vector<16x16xbf16>, vector<16x128xbf16>, vector<16x128xf32> -> vector<16x128xf32>
    %c0_39 = arith.constant 0 : index
    %c0_40 = arith.constant 0 : index
    %51 = vector.load %arg15[%c0_39, %c0_40] : memref<1x128xf32, #tpu.memory_space<vmem>>, vector<1x128xf32>
    %52 = vector.broadcast %51 : vector<1x128xf32> to vector<16x128xf32>
    %53 = arith.addf %50, %52 : vector<16x128xf32>
    %c0_41 = arith.constant 0 : index
    %c0_42 = arith.constant 0 : index
    %54 = vector.load %arg16[%c0_41, %c0_42] : memref<16x128xf32, #tpu.memory_space<vmem>>, vector<16x128xf32>
    tpu.vector_store %arg16[%c0_41, %c0_42], %53 {strides = array<i32>} : memref<16x128xf32, #tpu.memory_space<vmem>>, vector<16x128xf32>,
    return
  }
  func.func @transform_0(%arg0: i32) -> (i32, i32) {
    %c0_i32 = arith.constant 0 : i32
    %c0_i32_0 = arith.constant 0 : i32
    return %arg0, %c0_i32 : i32, i32
  }
  func.func @transform_1(%arg0: i32) -> (i32, i32) {
    %c0_i32 = arith.constant 0 : i32
    %c0_i32_0 = arith.constant 0 : i32
    %c0_i32_1 = arith.constant 0 : i32
    return %c0_i32, %c0_i32_0 : i32, i32
  }
  func.func @transform_2(%arg0: i32) -> (i32, i32) {
    %c0_i32 = arith.constant 0 : i32
    %c0_i32_0 = arith.constant 0 : i32
    %c0_i32_1 = arith.constant 0 : i32
    return %c0_i32, %c0_i32_0 : i32, i32
  }
  func.func @transform_3(%arg0: i32) -> (i32, i32) {
    %c0_i32 = arith.constant 0 : i32
    %c0_i32_0 = arith.constant 0 : i32
    %c0_i32_1 = arith.constant 0 : i32
    return %c0_i32, %c0_i32_0 : i32, i32
  }
  func.func @transform_4(%arg0: i32) -> (i32, i32) {
    %c0_i32 = arith.constant 0 : i32
    %c0_i32_0 = arith.constant 0 : i32
    %c0_i32_1 = arith.constant 0 : i32
    return %c0_i32, %c0_i32_0 : i32, i32
  }
  func.func @transform_5(%arg0: i32) -> (i32, i32) {
    %c0_i32 = arith.constant 0 : i32
    %c0_i32_0 = arith.constant 0 : i32
    %c0_i32_1 = arith.constant 0 : i32
    return %c0_i32, %c0_i32_0 : i32, i32
  }
  func.func @transform_6(%arg0: i32) -> (i32, i32) {
    %c0_i32 = arith.constant 0 : i32
    %c0_i32_0 = arith.constant 0 : i32
    %c0_i32_1 = arith.constant 0 : i32
    return %c0_i32, %c0_i32_0 : i32, i32
  }
  func.func @transform_7(%arg0: i32) -> (i32, i32) {
    %c0_i32 = arith.constant 0 : i32
    %c0_i32_0 = arith.constant 0 : i32
    %c0_i32_1 = arith.constant 0 : i32
    return %c0_i32, %c0_i32_0 : i32, i32
  }
  func.func @transform_8(%arg0: i32) -> (i32, i32) {
    %c0_i32 = arith.constant 0 : i32
    %c0_i32_0 = arith.constant 0 : i32
    %c0_i32_1 = arith.constant 0 : i32
    return %c0_i32, %c0_i32_0 : i32, i32
  }
  func.func @transform_9(%arg0: i32) -> (i32, i32) {
    %c0_i32 = arith.constant 0 : i32
    %c0_i32_0 = arith.constant 0 : i32
    %c0_i32_1 = arith.constant 0 : i32
    return %c0_i32, %c0_i32_0 : i32, i32
  }
  func.func @transform_10(%arg0: i32) -> (i32, i32) {
    %c0_i32 = arith.constant 0 : i32
    %c0_i32_0 = arith.constant 0 : i32
    %c0_i32_1 = arith.constant 0 : i32
    return %c0_i32, %c0_i32_0 : i32, i32
  }
  func.func @transform_11(%arg0: i32) -> (i32, i32) {
    %c0_i32 = arith.constant 0 : i32
    %c0_i32_0 = arith.constant 0 : i32
    %c0_i32_1 = arith.constant 0 : i32
    return %c0_i32, %c0_i32_0 : i32, i32
  }
  func.func @transform_12(%arg0: i32) -> (i32, i32) {
    %c0_i32 = arith.constant 0 : i32
    %c0_i32_0 = arith.constant 0 : i32
    %c0_i32_1 = arith.constant 0 : i32
    return %c0_i32, %c0_i32_0 : i32, i32
  }
  func.func @transform_13(%arg0: i32) -> (i32, i32) {
    %c0_i32 = arith.constant 0 : i32
    %c0_i32_0 = arith.constant 0 : i32
    %c0_i32_1 = arith.constant 0 : i32
    return %c0_i32, %c0_i32_0 : i32, i32
  }
  func.func @transform_14(%arg0: i32) -> (i32, i32) {
    %c0_i32 = arith.constant 0 : i32
    %c0_i32_0 = arith.constant 0 : i32
    %c0_i32_1 = arith.constant 0 : i32
    return %c0_i32, %c0_i32_0 : i32, i32
  }
  func.func @transform_15(%arg0: i32) -> (i32, i32) {
    %c0_i32 = arith.constant 0 : i32
    %c0_i32_0 = arith.constant 0 : i32
    return %arg0, %c0_i32 : i32, i32
  }
}

</mosaic_0001>

<bundles_post_ra>
// kernel: tpu_custom_call.1
= control target key start
LH: loop header
LB: loop body
LE: loop exit
PB: predicated region body
PF: predicated region fallthrough
CT: control target
= control target key end

     0   :  { %s1780_s0 = inlined_call_operand.vmem [shape: bf16[16,9], index: 0, kind: input, shape index: {}]   ;;  %s1781_s1 = inlined_call_operand.vmem [shape: bf16[9,36], index: 1, kind: input, shape index: {}]   ;;  %s1782_s2 = inlined_call_operand.hbm [shape: f32[1,36], index: 2, kind: input, shape index: {}]   ;;  %s1783_s3 = inlined_call_operand.hbm [shape: bf16[36,144], index: 3, kind: input, shape index: {}]   ;;  %s1784_s4 = inlined_call_operand.vmem [shape: f32[1,144], index: 4, kind: input, shape index: {}]   ;;  %s1785_s5 = inlined_call_operand.vmem [shape: bf16[144,288], index: 5, kind: input, shape index: {}]   ;;  %s1786_s6 = inlined_call_operand.hbm [shape: f32[1,288], index: 6, kind: input, shape index: {}]   ;;  %s1787_s7 = inlined_call_operand.vmem [shape: bf16[288,64], index: 7, kind: input, shape index: {}]   ;;  %s1788_s8 = inlined_call_operand.hbm [shape: f32[1,64], index: 8, kind: input, shape index: {}]   ;;  %s1789_s9 = inlined_call_operand.vmem [shape: bf16[64,32], index: 9, kind: input, shape index: {}]   ;;  %s1790_s10 = inlined_call_operand.vmem [shape: f32[1,32], index: 10, kind: input, shape index: {}]   ;;  %s1791_s11 = inlined_call_operand.vmem [shape: bf16[32,16], index: 11, kind: input, shape index: {}]   ;;  %s1792_s12 = inlined_call_operand.vmem [shape: f32[1,16], index: 12, kind: input, shape index: {}]   ;;  %s1793_s13 = inlined_call_operand.vmem [shape: bf16[16,128], index: 13, kind: input, shape index: {}]   ;;  %s1794_s14 = inlined_call_operand.vmem [shape: f32[1,128], index: 14, kind: input, shape index: {}]   ;;  %s1795_s15 = inlined_call_operand.hbm [shape: f32[16,128], index: 15, kind: output, shape index: {}]  }
   0x1   :  { %1797 = sst [smem:[#allocation15_spill]] %s1795_s15 }
   0x2   :  { %20 = vsyncpa [#allocation3], 0 }
   0x3   :  { %21 = vsyncpa [#allocation6], 0 }
   0x4   :  { %22 = vsyncpa [#allocation9], 0 }
   0x5   :  { %23 = vsyncpa [#allocation4], 0  ;;  %s1401_s18 = smov [#allocation5]   ;;  %s1283_s22 = scalar_lea.hbm %s1783_s3, 640 }
   0x6   :  { %s43_s19 = sshll.u32 %s1401_s18, 4  ;;  %p1284_p0 = scmp.ne.s32.totalorder %s1783_s3, %s1283_s22  ;;  %s44_s19 = int_to_ptr.vmem [resolvable:$true] %s43_s19 }
   0x7   :  { %p1287_p1 = scmp.lt.u32.totalorder %s1283_s22, %s1783_s3 }
   0x9   :  { %p1289_p2 = pnand %p1287_p1, %p1284_p0 }
   0xb   :  { %1292 = shalt.err (!%p1289_p2)
}
   0xc   :  { %s1293_s27 = scalar_lea.vmem %s44_s19, 640  ;;  %p1298_p4 = scmp.lt.s32.totalorder %s44_s19, %s44_s19 }
   0xd   :  { %p1294_p3 = scmp.ne.s32.totalorder %s44_s19, %s1293_s27  ;;  %p1299_p5 = scmp.lt.s32.totalorder %s1293_s27, %s1293_s27 }
   0xf   :  { %p1300_p6 = por %p1299_p5, %p1298_p4 }
  0x11   :  { %p1301_p7 = pnand %p1300_p6, %p1294_p3 }
  0x13   :  { %1304 = shalt.err (!%p1301_p7)
}
  0x14   :  { %s1402_s28 = smov 128   ;;  %s1403_s29 = smov 8  }
  0x15   :  { %49 = dma.hbm_to_vmem [thread:$0]  %s1783_s3, 640, %s44_s19, [#allocation6], %s1402_s28, %s1402_s28, %s1403_s29  }
  0x16   :  { %s1404_s17 = smov [#allocation2]   ;;  %s1405_s20 = smov [#allocation7]  }
  0x17   :  { %s34_s18 = sshll.u32 %s1404_s17, 4  ;;  %s60_s21 = sshll.u32 %s1405_s20, 4  ;;  %s35_s18 = int_to_ptr.vmem [resolvable:$true] %s34_s18  ;;  %s61_s21 = int_to_ptr.vmem [resolvable:$true] %s60_s21 }
  0x18   :  { %s1305_s24 = scalar_lea.hbm %s1782_s2, 16 }
  0x19   :  { %p1306_p8 = scmp.ne.s32.totalorder %s1782_s2, %s1305_s24  ;;  %p1309_p9 = scmp.lt.u32.totalorder %s1305_s24, %s1782_s2 }
  0x1b   :  { %p1311_p10 = pnand %p1309_p9, %p1306_p8 }
  0x1d   :  { %1314 = shalt.err (!%p1311_p10)
}
  0x1e   :  { %s1315_s3 = scalar_lea.vmem %s35_s18, 16  ;;  %s1319_s19 = scalar_lea.vmem %s35_s18, 32 }
  0x1f   :  { %p1316_p11 = scmp.ne.s32.totalorder %s35_s18, %s1315_s3  ;;  %p1320_p12 = scmp.lt.s32.totalorder %s35_s18, %s35_s18 }
  0x20   :  { %p1321_p13 = scmp.lt.s32.totalorder %s1319_s19, %s1315_s3 }
  0x22   :  { %p1322_p0 = por %p1321_p13, %p1320_p12 }
  0x24   :  { %p1323_p1 = pnand %p1322_p0, %p1316_p11 }
  0x26   :  { %1326 = shalt.err (!%p1323_p1)
}
  0x27   :  { %37 = dma.hbm_to_vmem [thread:$0]  %s1782_s2, 16, %s35_s18, [#allocation3]  }
  0x28   :  { %s1327_s15 = scalar_lea.hbm %s1786_s6, 48 }
  0x29   :  { %p1328_p2 = scmp.ne.s32.totalorder %s1786_s6, %s1327_s15  ;;  %p1331_p3 = scmp.lt.u32.totalorder %s1327_s15, %s1786_s6 }
  0x2b   :  { %p1333_p4 = pnand %p1331_p3, %p1328_p2 }
  0x2d   :  { %1336 = shalt.err (!%p1333_p4)
}
  0x2e   :  { %s1337_s26 = scalar_lea.vmem %s61_s21, 48  ;;  %s1341_s27 = scalar_lea.vmem %s61_s21, 64 }
  0x2f   :  { %p1338_p5 = scmp.ne.s32.totalorder %s61_s21, %s1337_s26  ;;  %p1342_p6 = scmp.lt.s32.totalorder %s61_s21, %s61_s21 }
  0x30   :  { %p1343_p7 = scmp.lt.s32.totalorder %s1341_s27, %s1337_s26 }
  0x32   :  { %p1344_p8 = por %p1343_p7, %p1342_p6 }
  0x34   :  { %p1345_p9 = pnand %p1344_p8, %p1338_p5 }
  0x36   :  { %1348 = shalt.err (!%p1345_p9)
}
  0x37   :  { %63 = dma.hbm_to_vmem [thread:$0]  %s1786_s6, 48, %s61_s21, [#allocation6]  }
  0x38   :  { %s1406_s3 = smov [#allocation8]   ;;  %s1349_s17 = scalar_lea.hbm %s1788_s8, 16 }
  0x39   :  { %s72_s19 = sshll.u32 %s1406_s3, 4  ;;  %p1350_p10 = scmp.ne.s32.totalorder %s1788_s8, %s1349_s17  ;;  %s73_s19 = int_to_ptr.vmem [resolvable:$true] %s72_s19 }
  0x3a   :  { %p1353_p11 = scmp.lt.u32.totalorder %s1349_s17, %s1788_s8 }
  0x3c   :  { %p1355_p12 = pnand %p1353_p11, %p1350_p10 }
  0x3e   :  { %1358 = shalt.err (!%p1355_p12)
}
  0x3f   :  { %s1359_s24 = scalar_lea.vmem %s73_s19, 16  ;;  %s1363_s6 = scalar_lea.vmem %s73_s19, 32 }
  0x40   :  { %p1360_p13 = scmp.ne.s32.totalorder %s73_s19, %s1359_s24  ;;  %p1364_p0 = scmp.lt.s32.totalorder %s73_s19, %s73_s19 }
  0x41   :  { %p1365_p1 = scmp.lt.s32.totalorder %s1363_s6, %s1359_s24 }
  0x43   :  { %p1366_p2 = por %p1365_p1, %p1364_p0 }
  0x45   :  { %p1367_p3 = pnand %p1366_p2, %p1360_p13 }
  0x47   :  { %1370 = shalt.err (!%p1367_p3)
}
  0x48   :  { %75 = dma.hbm_to_vmem [thread:$0]  %s1788_s8, 16, %s73_s19, [#allocation9]  }
  0x49   :  { %1393 = dma.done.wait [#allocation3], 16  }
  0x4a   :  { %1394 = vsyncadd [#allocation3], 4294967280 }
  0x4b   :  { %1395 = dma.done.wait [#allocation6], 688  }
  0x4c   :  { %1396 = vsyncadd [#allocation6], 4294966608 }
  0x4d   :  { %1397 = dma.done.wait [#allocation9], 16  }
  0x4e   :  { %1398 = vsyncadd [#allocation9], 4294967280  ;;  %vm126_vm0 = vcmask 1043456   ;;  %v1407_v0 = vmov 0.0   ;;  %vm1408_vm1 = vmmov 0   ;;  %vm127_vm2 = vcmask 1044480  }
  0x4f   :  { %1161 = vmatprep.subr.bf16.mxu0 %v1407_v0  ;;  %1163 = vmatprep.mubr.msk.bf16.mxu0 %vm1408_vm1, %v1407_v0  ;;  %v1409_v1 = vmov 65535   ;;  %v1212_v4 = vld [vmem:[%s1781_s1] sm:$0x1f]   ;;  %v1214_v6 = vld [vmem:[#allocation5 + $0x4] ss:$8 sps:$4 sm:$0xff]   ;;  %vm122_vm3 = vcmask 72704   ;;  %v184_v54 = vlaneseq }
  0x50   :  { %v128_v2 = vsel %vm126_vm0, 4294967295, %v1409_v1  ;;  %v1213_v7 = vld [vmem:[%s1780_s0] sm:$0xff]   ;;  %230 = vmatprep.subr.bf16.mxu1 %v1214_v6  ;;  %v1219_v10 = vld [vmem:[#allocation5 + $0x10] ss:$8 sps:$4 sm:$0xff]   ;;  %vm223_vm4 = vcmask 1041408   ;;  %v1410_v15 = vmov 0  }
  0x51   :  { %v129_v3 = vsel %vm127_vm2, %v128_v2, 0  ;;  %v1216_v8 = vld [vmem:[#allocation5] ss:$8 sps:$4 sm:$0xff]   ;;  %v1217_v9 = vld [vmem:[#allocation5 + $0x14] ss:$8 sps:$4 sm:$0xff]   ;;  %262 = vmatprep.mubr.bf16.mxu1 %v1410_v15  ;;  %vm219_vm5 = vcmask 293888  }
  0x52   :  { %v131_v5 = vand.u32 %v1212_v4, %v129_v3  ;;  %231 = vmatpush1.bf16.msra.mxu1 %v1216_v8  ;;  %v181_v11 = vld [vmem:[#allocation5 + $0x20] sm:$0x33]  ;;  %v1228_v18 = vld [vmem:[%s1785_s5 + $0x1c] ss:$12 sps:$4 sm:$0xff]   ;;  %v1236_v22 = vld [vmem:[%s1785_s5 + $0x4c] ss:$12 sps:$4 sm:$0xff]  }
  0x53   :  { %232 = vmatprep.subr.bf16.mxu1 %v1217_v9  ;;  %v1059_v12 = vcombine.high %v181_v11, %v181_v11  ;;  %v1058_v13 = vcombine.low %v181_v11, %v181_v11  ;;  %v1222_v16 = vld [vmem:[%s1785_s5] ss:$12 sps:$4 sm:$0xff]   ;;  %v1224_v17 = vld [vmem:[%s1785_s5 + $0x4] ss:$12 sps:$4 sm:$0xff]   ;;  %v1234_v23 = vld [vmem:[%s1785_s5 + $0x48] ss:$12 sps:$4 sm:$0xff]  }
  0x54   :  { %1162 = vmatpush3.bf16.msra.mxu0 %v131_v5  ;;  %v1226_v19 = vld [vmem:[%s1785_s5 + $0x18] ss:$12 sps:$4 sm:$0xff]   ;;  %v1232_v20 = vld [vmem:[%s1785_s5 + $0x34] ss:$12 sps:$4 sm:$0xff]   ;;  %v1230_v21 = vld [vmem:[%s1785_s5 + $0x30] ss:$12 sps:$4 sm:$0xff]  }
  0x55   :  { %v225_v14 = vsel %vm223_vm4, %v1058_v13, 0  ;;  %480 = vmatprep.subr.bf16.mxu0 %v1224_v17  ;;  %v1240_v24 = vld [vmem:[%s1785_s5 + $0x64] ss:$12 sps:$4 sm:$0xff]   ;;  %v1238_v25 = vld [vmem:[%s1785_s5 + $0x60] ss:$12 sps:$4 sm:$0xff]   ;;  %v1647_v55 = vshrl.u32 %v184_v54, 7 }
  0x56   :  { %233 = vmatpush1.bf16.msra.mxu1 %v1219_v10  ;;  %v1244_v26 = vld [vmem:[%s1785_s5 + $0x7c] ss:$12 sps:$4 sm:$0xff]   ;;  %v1242_v27 = vld [vmem:[%s1785_s5 + $0x78] ss:$12 sps:$4 sm:$0xff]   ;;  %v1248_v28 = vld [vmem:[%s1785_s5 + $0x94] ss:$12 sps:$4 sm:$0xff]  }
  0x57   :  { %1164 = vmatmul.mubr.msk.bf16.vlgmr.msra.gmra.mrb[0].mxu0 %vm122_vm3, %v1213_v7  ;;  %1060 = vmatprep.subr.msk.bf16.mxu1 %vm223_vm4, %v1059_v12  ;;  %v1246_v29 = vld [vmem:[%s1785_s5 + $0x90] ss:$12 sps:$4 sm:$0xff]   ;;  %v1050_v30 = vld [vmem:[#allocation2] ss:$0 sm:$0xff]  ;;  %v1225_v39 = vld [vmem:[%s1785_s5 + $0x8] ss:$12 sps:$4 sm:$0xff]  }
  0x58   :  { %481 = vmatpush1.bf16.msra.mxu0 %v1222_v16  ;;  %v1229_v41 = vld [vmem:[%s1785_s5 + $0x20] ss:$12 sps:$4 sm:$0xff]   ;;  %v1233_v42 = vld [vmem:[%s1785_s5 + $0x38] ss:$12 sps:$4 sm:$0xff]   ;;  %v1237_v43 = vld [vmem:[%s1785_s5 + $0x50] ss:$12 sps:$4 sm:$0xff]  }
  0x59   :  { %482 = vmatprep.subr.bf16.mxu0 %v1228_v18  ;;  %v1241_v44 = vld [vmem:[%s1785_s5 + $0x68] ss:$12 sps:$4 sm:$0xff]   ;;  %v1245_v45 = vld [vmem:[%s1785_s5 + $0x80] ss:$12 sps:$4 sm:$0xff]   ;;  %v1249_v46 = vld [vmem:[%s1785_s5 + $0x98] ss:$12 sps:$4 sm:$0xff]  }
  0x5a   :  { %235 = vmatpush1.bf16.msra.mxu1 %v225_v14  ;;  %v1252_v47 = vld [vmem:[%s1785_s5 + $0xac] ss:$12 sps:$4 sm:$0xff]   ;;  %v1250_v48 = vld [vmem:[%s1785_s5 + $0xa8] ss:$12 sps:$4 sm:$0xff]   ;;  %v1253_v49 = vld [vmem:[%s1785_s5 + $0xb0] ss:$12 sps:$4 sm:$0xff]  }
  0x5b   :  { %523 = vmatprep.subr.bf16.mxu1 %v1410_v15  ;;  %v1256_v50 = vld [vmem:[%s1785_s5 + $0xc4] ss:$12 sps:$4 sm:$0xff]   ;;  %v1254_v51 = vld [vmem:[%s1785_s5 + $0xc0] ss:$12 sps:$4 sm:$0xff]   ;;  %v1257_v52 = vld [vmem:[%s1785_s5 + $0xc8] ss:$12 sps:$4 sm:$0xff]  }
  0x5c   :  { %483 = vmatpush1.bf16.msra.mxu0 %v1226_v19  ;;  %v1258_v53 = vld [vmem:[%s1787_s7 + $0x40] sm:$0xff]   ;;  %v186_v56 = vsub.s32 0, %v1647_v55  ;;  %v190_v58 = vsub.s32 1, %v1647_v55  ;;  %vm476_vm6 = vcmask 130048   ;;  %v1260_v13 = vld [vmem:[%s1787_s7 + $0x48] sm:$0xff]   ;;  %v1263_v16 = vld [vmem:[%s1787_s7 + $0x10] sm:$0xff]  }
  0x5d   :  { %484 = vmatprep.subr.bf16.mxu0 %v1232_v20  ;;  %v182_v57 = vld [vmem:[%s1784_s4] sm:$0x3]  ;;  %v1261_v14 = vld [vmem:[%s1787_s7 + $0x8] sm:$0xff]   ;;  %v1264_v17 = vld [vmem:[%s1787_s7 + $0x58] sm:$0xff]   ;;  %vm724_vm7 = vcmask 261120   ;;  %vm852_vm8 = vcmask 523264  }
  0x5e   :  { %v187_v59 = vrot.slane %v182_v57, %v186_v56  ;;  %v191_v60 = vrot.slane %v182_v57, %v190_v58  ;;  %v1259_v12 = vld [vmem:[%s1787_s7] sm:$0xff]   ;;  %v1265_v18 = vld [vmem:[%s1787_s7 + $0x18] sm:$0xff]  }
  0x5f   :  { %v1266_v19 = vld [vmem:[%s1787_s7 + $0x60] sm:$0xff]  }
  0x60   :  { %485 = vmatpush1.bf16.msra.mxu0 %v1230_v21  ;;  %v1267_v20 = vld [vmem:[%s1787_s7 + $0x20] sm:$0xff]   ;;  %v1268_v21 = vld [vmem:[%s1787_s7 + $0x68] sm:$0xff]  }
  0x61   :  { %486 = vmatprep.subr.bf16.mxu0 %v1236_v22  ;;  %v1269_v22 = vld [vmem:[%s1787_s7 + $0x28] sm:$0xff]   ;;  %v1276_v57 = vld [vmem:[%s1789_s9] sm:$0xff]  }
  0x64   :  { %487 = vmatpush1.bf16.msra.mxu0 %v1234_v23  ;;  %v1270_v23 = vld [vmem:[%s1787_s7 + $0x80] sm:$0xff]  }
  0x65   :  { %488 = vmatprep.subr.bf16.mxu0 %v1240_v24  ;;  %v1271_v24 = vld [vmem:[%s1787_s7 + $0x70] sm:$0xff]  }
  0x68   :  { %489 = vmatpush1.bf16.msra.mxu0 %v1238_v25  ;;  %v1272_v25 = vld [vmem:[%s1787_s7 + $0x30] sm:$0xff]  }
  0x69   :  { %490 = vmatprep.subr.bf16.mxu0 %v1244_v26  ;;  %v1273_v26 = vld [vmem:[%s1787_s7 + $0x88] sm:$0xff]  }
  0x6c   :  { %491 = vmatpush1.bf16.msra.mxu0 %v1242_v27  ;;  %v1274_v27 = vld [vmem:[%s1787_s7 + $0x78] sm:$0xff]  }
  0x6d   :  { %492 = vmatprep.subr.bf16.mxu0 %v1248_v28  ;;  %v1275_v28 = vld [vmem:[%s1787_s7 + $0x38] sm:$0xff]  }
  0x70   :  { %493 = vmatpush1.bf16.msra.mxu0 %v1246_v29  ;;  %v327_v29 = vsub.s32 2, %v1647_v55 }
  0x71   :  { %494 = vmatprep.subr.bf16.mxu0 %v1252_v47 }
  0x74   :  { %495 = vmatpush1.bf16.msra.mxu0 %v1250_v48 }
  0x75   :  { %496 = vmatprep.subr.bf16.mxu0 %v1256_v50 }
  0x78   :  { %497 = vmatpush1.bf16.msra.mxu0 %v1254_v51 }
  0x79   :  { %1126 = vmatprep.subr.bf16.mxu0 %v1258_v53 }
 0x12a   :  { %v167_v31 = vpop.f32.mrb[0].mxu0 }
 0x12b   :  { %v168_v32 = vadd.f32 %v1050_v30, %v167_v31  ;;  %v1165_v33 = vpop.f32.mrb[1].mxu0 }
 0x12c   :  { %v170_v34 = vpop.f32.mrb[2].mxu0 }
 0x12d   :  { %v171_v35 = vadd.f32 %v1050_v30, %v170_v34  ;;  %v1166_v36 = vpop.f32.mrb[3].mxu0  ;;  %v174_v37 = vmax.f32 %v168_v32, 0.0  ;;  %v315_v30 = vld [vmem:[#allocation7] sm:$0x7] }
 0x12e   :  { %v320_v31 = vrot.slane %v315_v30, %v186_v56  ;;  %v328_v32 = vrot.slane %v315_v30, %v327_v29  ;;  %v324_v33 = vrot.slane %v315_v30, %v190_v58  ;;  %v1277_v58 = vld [vmem:[%s1789_s9 + $0x8] sm:$0xff]  }
 0x12f   :  { %v175_v38 = vmax.f32 %v171_v35, 0.0 }
 0x131   :  { %v176_v40 = vpack.c.bf16 %v175_v38, %v174_v37 }
 0x133   :  { %1061 = vmatmul.mubr.msk.bf16.vlgmr.msra.gmra.mrb[0].mxu1 %vm219_vm5, %v176_v40 }
 0x134   :  { %524 = vmatpush1.bf16.msra.mxu1 %v1225_v39 }
 0x135   :  { %525 = vmatprep.subr.bf16.mxu1 %v1410_v15 }
 0x138   :  { %526 = vmatpush1.bf16.msra.mxu1 %v1229_v41 }
 0x139   :  { %527 = vmatprep.subr.bf16.mxu1 %v1410_v15 }
 0x13c   :  { %528 = vmatpush1.bf16.msra.mxu1 %v1233_v42 }
 0x13d   :  { %529 = vmatprep.subr.bf16.mxu1 %v1410_v15 }
 0x140   :  { %530 = vmatpush1.bf16.msra.mxu1 %v1237_v43 }
 0x141   :  { %531 = vmatprep.subr.bf16.mxu1 %v1410_v15 }
 0x144   :  { %532 = vmatpush1.bf16.msra.mxu1 %v1241_v44 }
 0x145   :  { %533 = vmatprep.subr.bf16.mxu1 %v1410_v15 }
 0x148   :  { %534 = vmatpush1.bf16.msra.mxu1 %v1245_v45 }
 0x149   :  { %535 = vmatprep.subr.bf16.mxu1 %v1410_v15 }
 0x14c   :  { %536 = vmatpush1.bf16.msra.mxu1 %v1249_v46 }
 0x14d   :  { %537 = vmatprep.subr.bf16.mxu1 %v1410_v15 }
 0x150   :  { %538 = vmatpush1.bf16.msra.mxu1 %v1253_v49 }
 0x151   :  { %539 = vmatprep.subr.bf16.mxu1 %v1410_v15  ;;  %v1262_v15 = vld [vmem:[%s1787_s7 + $0x50] sm:$0xff]  }
 0x154   :  { %540 = vmatpush1.bf16.msra.mxu1 %v1257_v52 }
 0x155   :  { %1167 = vmatprep.subr.bf16.mxu1 %v1407_v0 }
 0x206   :  { %v264_v61 = vpop.f32.mrb[0].mxu1 }
 0x207   :  { %v265_v62 = vadd.f32 %v264_v61, %v187_v59  ;;  %v266_v63 = vpop.f32.mrb[1].mxu1 }
 0x208   :  { %v267_v1 = vadd.f32 %v266_v63, %v191_v60  ;;  %v268_v2 = vpop.f32.mrb[2].mxu1 }
 0x209   :  { %v269_v3 = vadd.f32 %v268_v2, %v187_v59  ;;  %v270_v4 = vpop.f32.mrb[3].mxu1  ;;  %v273_v6 = vmax.f32 %v265_v62, 0.0  ;;  %v1278_v59 = vld [vmem:[%s1789_s9 + $0x10] sm:$0xff]   ;;  %v1091_v2 = vld [vmem:[#allocation8] ss:$0 sm:$0xff] }
 0x20a   :  { %v271_v5 = vadd.f32 %v270_v4, %v191_v60  ;;  %v274_v8 = vmax.f32 %v267_v1, 0.0  ;;  %v1279_v60 = vld [vmem:[%s1789_s9 + $0x18] sm:$0xff]  }
 0x20b   :  { %v275_v7 = vmax.f32 %v269_v3, 0.0 }
 0x20c   :  { %v276_v9 = vmax.f32 %v271_v5, 0.0 }
 0x20d   :  { %v277_v10 = vpack.c.bf16 %v275_v7, %v273_v6 }
 0x20e   :  { %v278_v11 = vpack.c.bf16 %v276_v9, %v274_v8 }
 0x210   :  { %1089 = vmatprep.mubr.msk.bf16.mxu0 %vm476_vm6, %v278_v11  ;;  %1090 = vmatprep.mubr.msk.bf16.mxu1 %vm476_vm6, %v278_v11 }
 0x211   :  { %513 = vmatmul.mubr.bf16.vlgmr.msra.gmra.mrb[4].mxu0 %v277_v10  ;;  %556 = vmatmul.mubr.bf16.vlgmr.msra.gmra.mrb[4].mxu1 %v277_v10 }
 0x212   :  { %1127 = vmatpush3.bf16.msra.mxu0 %v1259_v12  ;;  %1171 = vmatprep.mubr.msk.bf16.mxu1 %vm1408_vm1, %v1407_v0 }
 0x213   :  { %1128 = vmatprep.subr.bf16.mxu0 %v1260_v13  ;;  %1168 = vmatpush3.bf16.msra.mxu1 %v1270_v23 }
 0x214   :  { %1169 = vmatprep.subr.bf16.mxu1 %v1407_v0 }
 0x216   :  { %1129 = vmatpush3.bf16.msra.mxu0 %v1261_v14 }
 0x217   :  { %1130 = vmatprep.subr.bf16.mxu0 %v1262_v15  ;;  %1170 = vmatpush3.bf16.msra.mxu1 %v1273_v26 }
 0x218   :  { %1175 = vmatprep.subr.bf16.mxu1 %v1407_v0 }
 0x21a   :  { %1131 = vmatpush3.bf16.msra.mxu0 %v1263_v16  ;;  %v1280_v16 = vld [vmem:[%s1791_s11] sm:$0xff]  }
 0x21b   :  { %1132 = vmatprep.subr.bf16.mxu0 %v1264_v17  ;;  %v1281_v17 = vld [vmem:[%s1791_s11 + $0x8] sm:$0xff]  }
 0x21e   :  { %1133 = vmatpush3.bf16.msra.mxu0 %v1265_v18  ;;  %v1111_v18 = vld [vmem:[%s1790_s10] ss:$0 sm:$0xff] }
 0x21f   :  { %1134 = vmatprep.subr.bf16.mxu0 %v1266_v19 }
 0x222   :  { %1135 = vmatpush3.bf16.msra.mxu0 %v1267_v20 }
 0x223   :  { %1136 = vmatprep.subr.bf16.mxu0 %v1268_v21 }
 0x226   :  { %1137 = vmatpush3.bf16.msra.mxu0 %v1269_v22 }
 0x227   :  { %1138 = vmatprep.subr.bf16.mxu0 %v1271_v24 }
 0x22a   :  { %1139 = vmatpush3.bf16.msra.mxu0 %v1272_v25 }
 0x22b   :  { %1140 = vmatprep.subr.bf16.mxu0 %v1274_v27 }
 0x22e   :  { %1141 = vmatpush3.bf16.msra.mxu0 %v1275_v28  ;;  %v1117_v28 = vld [vmem:[%s1792_s12] ss:$0 sm:$0xff] }
 0x22f   :  { %1187 = vmatprep.subr.bf16.mxu0 %v1407_v0 }
 0x2e4   :  { %v514_v34 = vpop.f32.mrb[4].mxu0  ;;  %v557_v35 = vpop.f32.mrb[4].mxu1 }
 0x2e5   :  { %v515_v36 = vadd.f32 %v514_v34, %v320_v31  ;;  %v558_v37 = vadd.f32 %v557_v35, %v328_v32  ;;  %v516_v38 = vpop.f32.mrb[5].mxu0  ;;  %v559_v39 = vpop.f32.mrb[5].mxu1 }
 0x2e6   :  { %v517_v40 = vadd.f32 %v516_v38, %v324_v33  ;;  %v518_v41 = vpop.f32.mrb[6].mxu0  ;;  %v560_v42 = vpop.f32.mrb[6].mxu1  ;;  %v1121_v38 = vld [vmem:[%s1794_s14] ss:$0 sm:$0xff] }
 0x2e7   :  { %v519_v43 = vadd.f32 %v518_v41, %v320_v31  ;;  %v561_v44 = vadd.f32 %v560_v42, %v328_v32  ;;  %v520_v45 = vpop.f32.mrb[7].mxu0  ;;  %v562_v46 = vpop.f32.mrb[7].mxu1  ;;  %v564_v48 = vmax.f32 %v515_v36, 0.0  ;;  %v566_v49 = vmax.f32 %v558_v37, 0.0 }
 0x2e8   :  { %v521_v47 = vadd.f32 %v520_v45, %v324_v33  ;;  %v565_v52 = vmax.f32 %v517_v40, 0.0 }
 0x2e9   :  { %v567_v50 = vmax.f32 %v519_v43, 0.0  ;;  %v569_v51 = vmax.f32 %v561_v44, 0.0 }
 0x2ea   :  { %v568_v53 = vmax.f32 %v521_v47, 0.0 }
 0x2eb   :  { %v570_v54 = vpack.c.bf16 %v567_v50, %v564_v48  ;;  %v572_v55 = vpack.c.bf16 %v569_v51, %v566_v49 }
 0x2ec   :  { %v571_v56 = vpack.c.bf16 %v568_v53, %v565_v52 }
 0x2ed   :  { %1172 = vmatmul.mubr.msk.bf16.vlgmr.msra.gmra.mrb[8].mxu1 %vm724_vm7, %v572_v55 }
 0x2ee   :  { %760 = vmatprep.mubr.bf16.mxu0 %v571_v56  ;;  %1183 = vmatprep.mubr.msk.bf16.mxu1 %vm1408_vm1, %v1407_v0 }
 0x2ef   :  { %761 = vmatmul.mubr.bf16.vlgmr.msra.gmra.mrb[8].mxu0 %v570_v54  ;;  %1176 = vmatpush3.bf16.msra.mxu1 %v1276_v57 }
 0x2f0   :  { %1191 = vmatprep.mubr.msk.bf16.mxu0 %vm1408_vm1, %v1407_v0  ;;  %1177 = vmatprep.subr.bf16.mxu1 %v1407_v0 }
 0x2f1   :  { %1188 = vmatpush3.bf16.msra.mxu0 %v1280_v16 }
 0x2f2   :  { %1189 = vmatprep.subr.bf16.mxu0 %v1407_v0 }
 0x2f3   :  { %1178 = vmatpush3.bf16.msra.mxu1 %v1277_v58 }
 0x2f4   :  { %1179 = vmatprep.subr.bf16.mxu1 %v1407_v0 }
 0x2f5   :  { %1190 = vmatpush3.bf16.msra.mxu0 %v1281_v17 }
 0x2f7   :  { %1180 = vmatpush3.bf16.msra.mxu1 %v1278_v59 }
 0x2f8   :  { %1181 = vmatprep.subr.bf16.mxu1 %v1407_v0 }
 0x2fb   :  { %1182 = vmatpush3.bf16.msra.mxu1 %v1279_v60 }
 0x2fc   :  { %1195 = vmatprep.subr.bf16.mxu1 %v1407_v0 }
 0x3c0   :  { %v803_v61 = vpop.f32.mrb[8].mxu1 }
 0x3c1   :  { %v1173_v62 = vpop.f32.mrb[9].mxu1 }
 0x3c2   :  { %v1142_v63 = vpop.f32.mrb[8].mxu0  ;;  %v806_v1 = vpop.f32.mrb[10].mxu1 }
 0x3c3   :  { %v1143_v3 = vpop.f32.mrb[9].mxu0  ;;  %v1174_v4 = vpop.f32.mrb[11].mxu1 }
 0x3c4   :  { %v1144_v5 = vadd.f32 %v1143_v3, %v1142_v63  ;;  %v1145_v6 = vpop.f32.mrb[10].mxu0 }
 0x3c5   :  { %v1146_v7 = vpop.f32.mrb[11].mxu0 }
 0x3c6   :  { %v763_v8 = vadd.f32 %v1144_v5, %v1091_v2  ;;  %v1147_v9 = vadd.f32 %v1146_v7, %v1145_v6 }
 0x3c8   :  { %v804_v10 = vadd.f32 %v803_v61, %v763_v8  ;;  %v766_v11 = vadd.f32 %v1147_v9, %v1091_v2 }
 0x3ca   :  { %v807_v12 = vadd.f32 %v806_v1, %v766_v11  ;;  %v810_v13 = vmax.f32 %v804_v10, 0.0 }
 0x3cc   :  { %v811_v14 = vmax.f32 %v807_v12, 0.0 }
 0x3ce   :  { %v812_v15 = vpack.c.bf16 %v811_v14, %v810_v13 }
 0x3d0   :  { %1184 = vmatmul.mubr.msk.bf16.vlgmr.msra.gmra.mrb[12].mxu1 %vm852_vm8, %v812_v15 }
 0x3d1   :  { %1197 = vmatprep.mubr.msk.bf16.mxu1 %vm1408_vm1, %v1407_v0  ;;  %v1282_v0 = vld [vmem:[%s1793_s13] sm:$0xff]   ;;  %s1411_s13 = smov [#allocation10]  }
 0x3d2   :  { %1196 = vmatpush3.bf16.msra.mxu1 %v1282_v0  ;;  %s1036_s18 = sshll.u32 %s1411_s13, 4  ;;  %s1037_s18 = int_to_ptr.vmem [resolvable:$true] %s1036_s18 }
 0x3d3   :  { %s1371_s12 = scalar_lea.vmem %s1037_s18, 256  ;;  %p1376_p5 = scmp.lt.s32.totalorder %s1037_s18, %s1037_s18 }
 0x3d4   :  { %p1372_p4 = scmp.ne.s32.totalorder %s1037_s18, %s1371_s12  ;;  %p1377_p6 = scmp.lt.s32.totalorder %s1371_s12, %s1371_s12 }
 0x3d6   :  { %p1378_p7 = por %p1377_p6, %p1376_p5 }
 0x3d8   :  { %p1379_p8 = pnand %p1378_p7, %p1372_p4 }
 0x4a3   :  { %v890_v19 = vpop.f32.mrb[12].mxu1 }
 0x4a4   :  { %v891_v20 = vadd.f32 %v1111_v18, %v890_v19  ;;  %v1185_v21 = vpop.f32.mrb[13].mxu1 }
 0x4a5   :  { %v893_v22 = vpop.f32.mrb[14].mxu1 }
 0x4a6   :  { %v894_v23 = vadd.f32 %v1111_v18, %v893_v22  ;;  %v1186_v24 = vpop.f32.mrb[15].mxu1  ;;  %v897_v25 = vmax.f32 %v891_v20, 0.0 }
 0x4a8   :  { %v898_v26 = vmax.f32 %v894_v23, 0.0 }
 0x4aa   :  { %v899_v27 = vpack.c.bf16 %v898_v26, %v897_v25 }
 0x4ac   :  { %1192 = vmatmul.mubr.msk.bf16.vlgmr.msra.gmra.mrb[12].mxu0 %vm724_vm7, %v899_v27 }
 0x57f   :  { %v960_v29 = vpop.f32.mrb[12].mxu0 }
 0x580   :  { %v961_v30 = vadd.f32 %v1117_v28, %v960_v29  ;;  %v1193_v31 = vpop.f32.mrb[13].mxu0 }
 0x581   :  { %v963_v32 = vpop.f32.mrb[14].mxu0 }
 0x582   :  { %v964_v33 = vadd.f32 %v1117_v28, %v963_v32  ;;  %v1194_v34 = vpop.f32.mrb[15].mxu0  ;;  %v967_v35 = vmax.f32 %v961_v30, 0.0 }
 0x584   :  { %v968_v36 = vmax.f32 %v964_v33, 0.0 }
 0x586   :  { %v969_v37 = vpack.c.bf16 %v968_v36, %v967_v35 }
 0x588   :  { %1198 = vmatmul.mubr.msk.bf16.vlgmr.msra.gmra.mrb[16].mxu1 %vm476_vm6, %v969_v37 }
 0x65b   :  { %v1022_v39 = vpop.f32.mrb[16].mxu1 }
 0x65c   :  { %v1023_v40 = vadd.f32 %v1121_v38, %v1022_v39  ;;  %v1199_v41 = vpop.f32.mrb[17].mxu1 }
 0x65d   :  { %v1025_v42 = vpop.f32.mrb[18].mxu1 }
 0x65e   :  { %1029 = vst [vmem:[#allocation10] sm:$0xff] %v1023_v40  ;;  %v1026_v43 = vadd.f32 %v1121_v38, %v1025_v42  ;;  %v1200_v44 = vpop.f32.mrb[19].mxu1 }
 0x660   :  { %1030 = vst [vmem:[#allocation10 + $0x8] sm:$0xff] %v1026_v43 }
 0x661   :  { %1382 = shalt.err (!%p1379_p8)
}
 0x662   :  { %s1798_s19 = sld [smem:[#allocation15_spill]] }
 0x668   :  { %s1383_s30 = scalar_lea.hbm %s1798_s19, 256 }
 0x669   :  { %p1384_p9 = scmp.ne.s32.totalorder %s1798_s19, %s1383_s30  ;;  %p1387_p10 = scmp.lt.u32.totalorder %s1383_s30, %s1798_s19 }
 0x66b   :  { %p1389_p11 = pnand %p1387_p10, %p1384_p9 }
 0x66d   :  { %1392 = shalt.err (!%p1389_p11)
}
 0x66e   :  { %1042 = dma.vmem_to_hbm [thread:$0]  %s1037_s18, 256, %s1798_s19, [#allocation4], %s1402_s28, %s1402_s28, %s1403_s29  }
 0x66f   :  { %1399 = dma.done.wait [#allocation4], 256  }
 0x670   :  { %1400 = vsyncadd [#allocation4], 4294967040 }
 0x671   :  { %1046 = vsyncpa [#allocation3], 1 }
 0x672   :  { %1047 = vsyncpa [#allocation6], 1 }
 0x673   :  { %1048 = vsyncpa [#allocation9], 1 }
 0x674   :  { %1049 = vsyncpa [#allocation4], 1 }

</bundles_post_ra>
